<compile_context>
chip_gen: v5e
topology: v5e:2x2
jax: 0.10.0
libtpu: 0.0.40
codegen_flags: <defaults>
</compile_context>

<pallas_src>
import math
from functools import partial

import jax
import jax.numpy as jnp
from jax.experimental import pallas as pl
from jax.experimental.pallas import tpu as pltpu


# ----------------------------------------------------------------------------- kernel
def _exp_mod_kernel(t_ref, nad_ref, x_ref, o_ref, *, shift):
    # t_ref:   (1, TL, 1)    time-grid tile
    # nad_ref: (1, 1, TD)    precomputed -|deltas| tile
    # x_ref:   (1, TL, TD)   one (batch, L-tile, D-tile) block of x
    t = t_ref[0, :, :].astype(jnp.float32)            # (TL, 1)
    nad = nad_ref[0, :, :].astype(jnp.float32)        # (1, TD)
    decay = jnp.exp(t * nad) + jnp.float32(shift)     # (TL, TD) f32; exp -> EUP slot
    x = x_ref[0, :, :]
    # f32 inputs: decay cast is a no-op -> exact f32 math (matches the reference).
    # bf16 inputs: multiply in bf16 (native VPU on v6e/v7x, compiler-widened on v5e).
    o_ref[0, :, :] = (x * decay.astype(x.dtype)).astype(o_ref.dtype)


# ------------------------------------------------------------------- tiling heuristics
def _vmem_capacity_bytes():
    """Best-effort physical VMEM query; falls back to the smallest generation (v7x)."""
    try:
        info = pltpu.get_tpu_info()
        cap = getattr(info, "vmem_capacity_bytes", None)
        if cap:
            return int(cap)
    except Exception:
        pass
    return 64 * 1024 * 1024


def _ceil_to(n, m):
    return ((n + m - 1) // m) * m


def _pick_tiles(L, D, x_itemsize, budget_bytes):
    """Pick (TL, TD) so the pipelined working set fits `budget_bytes`.

    Working set ~= 2 double-buffered x tiles + 2 double-buffered out tiles
    (t / -|deltas| tiles are negligible; there is no scratch anymore).
    TL is a multiple of 8, TD is a multiple of 128 (or the full extent when D < 128);
    the grid uses pl.cdiv so neither has to divide the array exactly.
    """
    bytes_per_elem = 4 * x_itemsize
    max_elems = max(budget_bytes // bytes_per_elem, 8 * 128)

    if D <= 128 or (D % 128 == 0 and 8 * D <= max_elems):
        # Full row: contiguous HBM rows, lane-dense stores, fewest grid steps.
        # (D < 128 -> full extent is required by the (8,128) rule; stores are masked,
        #  perf only -- pad D to a 128 multiple upstream if this config matters.)
        td = D
    else:
        td_fit = max((max_elems // 8) // 128, 1) * 128
        td = max(min(td_fit, (D // 128) * 128), 128)
        if D % 128 == 0:
            # Prefer a divisor of D (no masked tail tile).
            while td > 128 and D % td != 0:
                td -= 128

    tl_cap = max(((max_elems // td) // 8) * 8, 8)
    tl = min(_ceil_to(L, 8), tl_cap)
    return tl, td


# ------------------------------------------------------------------------------ wrapper
def make_deltas(d_model, fast_decay_pct=0.3, slow_decay_pct=1.5, target=0.01,
                dtype=jnp.float32):
    """Deterministic buffer init, matching the PyTorch __init__."""
    max_decay = math.log(target) / fast_decay_pct
    min_decay = math.log(target) / slow_decay_pct
    deltas = jnp.linspace(min_decay, max_decay, d_model, dtype=dtype)
    return deltas[None, None, :]                   # (1, 1, D)


def exponential_modulation(t, x, deltas, *, shift=0.05, modulate=True):
    """Pallas implementation of ExponentialModulation.forward(t, x)."""
    if not modulate:
        return x
    B, L, D = x.shape
    assert t.shape == (1, L, 1)
    assert deltas.shape == (1, 1, D)

    # Hoist |deltas| and the negation out of the kernel (fixed buffer, tiny op).
    neg_abs_deltas = -jnp.abs(deltas)

    itemsize = jnp.dtype(x.dtype).itemsize
    cap = _vmem_capacity_bytes()
    if cap <= 64 * 1024 * 1024:
        # v7x-class (64 MiB VMEM, ~3.2 TB/s HBM): bigger tiles to amortize the
        # ~0.35 us/step overhead, but leave headroom under the physical limit.
        budget = cap // 2 - (4 << 20)
    else:
        # v5e / v6e (128 MiB VMEM): previous budget is already ample.
        budget = min(cap // 3, 40 * 1024 * 1024)

    tl, td = _pick_tiles(L, D, itemsize, budget)
    nl, nd = pl.cdiv(L, tl), pl.cdiv(D, td)

    # v7x has 2 TensorCores: make sure there are at least 2 grid steps to shard.
    if B * nl * nd < 2 and tl > 8:
        tl = max(((tl // 2) // 8) * 8, 8)
        nl = pl.cdiv(L, tl)

    tile_bytes = tl * td * itemsize
    vmem_need = 4 * tile_bytes + 4 * (tl + td) * 4 + (2 << 20)   # I/O bufs + t/nad + headroom
    vmem_limit = int(min(max(vmem_need, 16 * 1024 * 1024), cap - (8 << 20)))

    kernel = partial(_exp_mod_kernel, shift=float(shift))
    return pl.pallas_call(
        kernel,
        out_shape=jax.ShapeDtypeStruct((B, L, D), x.dtype),
        grid=(B, nl, nd),
        in_specs=[
            pl.BlockSpec((1, tl, 1), lambda b, li, di: (0, li, 0)),    # t        (per L-tile)
            pl.BlockSpec((1, 1, td), lambda b, li, di: (0, 0, di)),    # -|deltas| (per D-tile)
            pl.BlockSpec((1, tl, td), lambda b, li, di: (b, li, di)),  # x
        ],
        out_specs=pl.BlockSpec((1, tl, td), lambda b, li, di: (b, li, di)),
        compiler_params=pltpu.CompilerParams(
            # Pure elementwise, no cross-iteration state: every axis is independent,
            # so all three can be megacore-sharded on v7x.
            dimension_semantics=("parallel", "parallel", "parallel"),
            vmem_limit_bytes=vmem_limit,
        ),
    )(t, neg_abs_deltas, x)


# --------------------------------------------------------------------------------- test
if __name__ == "__main__":
    key = jax.random.PRNGKey(0)
    shift = 0.05

    def ref_fn(t, x, deltas):
        decay = jnp.exp(-t.astype(jnp.float32) * jnp.abs(deltas.astype(jnp.float32)))
        return (x.astype(jnp.float32) * (decay + shift)).astype(x.dtype)

    k1, k2, k3 = jax.random.split(key, 3)

    # Case 1: lane-dense f32 (D multiple of 128 -> full-row contiguous tiles).
    B, L, D = 2, 16, 256
    x = jax.random.normal(k1, (B, L, D), dtype=jnp.float32)
    t = jnp.linspace(0.0, 1.0, L, endpoint=False, dtype=jnp.float32)[None, :, None]
    deltas = make_deltas(D)
    out = jax.block_until_ready(exponential_modulation(t, x, deltas, shift=shift))
    assert out.shape == (B, L, D)
    assert jnp.allclose(out, ref_fn(t, x, deltas), atol=1e-5, rtol=1e-5)

    # Case 2: bf16 I/O (bf16 multiply, decay computed in f32 and cast once).
    xb = x.astype(jnp.bfloat16)
    outb = jax.block_until_ready(exponential_modulation(t, xb, deltas, shift=shift))
    assert outb.dtype == jnp.bfloat16
    assert jnp.allclose(outb.astype(jnp.float32),
                        ref_fn(t, xb, deltas).astype(jnp.float32),
                        atol=3e-2, rtol=3e-2)

    # Case 3: small / odd D (full-extent lane block; masked stores -- perf only).
    B3, L3, D3 = 2, 8, 32
    x3 = jax.random.normal(k2, (B3, L3, D3), dtype=jnp.float32)
    t3 = jnp.linspace(0.0, 1.0, L3, endpoint=False, dtype=jnp.float32)[None, :, None]
    d3 = make_deltas(D3)
    out3 = jax.block_until_ready(exponential_modulation(t3, x3, d3, shift=shift))
    assert jnp.allclose(out3, ref_fn(t3, x3, d3), atol=1e-5, rtol=1e-5)

    # Case 4: L and D that do not divide the tile shapes (exercises the cdiv tails).
    B4, L4, D4 = 2, 12, 160
    x4 = jax.random.normal(k3, (B4, L4, D4), dtype=jnp.float32)
    t4 = jnp.linspace(0.0, 1.0, L4, endpoint=False, dtype=jnp.float32)[None, :, None]
    d4 = make_deltas(D4)
    out4 = jax.block_until_ready(exponential_modulation(t4, x4, d4, shift=shift))
    assert jnp.allclose(out4, ref_fn(t4, x4, d4), atol=1e-5, rtol=1e-5)

    # modulate=False passthrough (module semantics).
    assert exponential_modulation(t3, x3, d3, shift=shift, modulate=False) is x3

    print("KERNEL_OK")
</pallas_src>

<mosaic_0001>
module attributes {stable_mosaic.version = 11 : i64} {
  func.func @_exp_mod_kernel(%arg0: i32, %arg1: i32, %arg2: i32, %arg3: memref<1x16x1xf32, #tpu.memory_space<vmem>>, %arg4: memref<1x1x256xf32, #tpu.memory_space<vmem>>, %arg5: memref<1x16x256xf32, #tpu.memory_space<vmem>>, %arg6: memref<1x16x256xf32, #tpu.memory_space<vmem>>) attributes {dimension_semantics = [#tpu.dimension_semantics<parallel>, #tpu.dimension_semantics<parallel>, #tpu.dimension_semantics<parallel>], iteration_bounds = array<i64: 2, 1, 1>, scalar_prefetch = 0 : i64, scratch_operands = 0 : i64, tpu.core_type = #tpu.core_type<tc>, window_params = [{transform_indices = @transform_0, window_bounds = array<i64: 1, 16, 1>}, {transform_indices = @transform_1, window_bounds = array<i64: 1, 1, 256>}, {transform_indices = @transform_2, window_bounds = array<i64: 1, 16, 256>}, {transform_indices = @transform_3, window_bounds = array<i64: 1, 16, 256>}]} {
    %c0 = arith.constant 0 : index
    %c0_0 = arith.constant 0 : index
    %c0_1 = arith.constant 0 : index
    %0 = vector.load %arg3[%c0, %c0_0, %c0_1] : memref<1x16x1xf32, #tpu.memory_space<vmem>>, vector<1x16x1xf32>
    %1 = vector.shape_cast %0 : vector<1x16x1xf32> to vector<16x1xf32>
    %c0_2 = arith.constant 0 : index
    %c0_3 = arith.constant 0 : index
    %c0_4 = arith.constant 0 : index
    %2 = vector.load %arg4[%c0_2, %c0_3, %c0_4] : memref<1x1x256xf32, #tpu.memory_space<vmem>>, vector<1x1x256xf32>
    %3 = vector.shape_cast %2 : vector<1x1x256xf32> to vector<1x256xf32>
    %4 = vector.broadcast %1 : vector<16x1xf32> to vector<16x256xf32>
    %5 = vector.broadcast %3 : vector<1x256xf32> to vector<16x256xf32>
    %6 = arith.mulf %4, %5 : vector<16x256xf32>
    %7 = math.exp %6 : vector<16x256xf32>
    %cst = arith.constant 5.000000e-02 : f32
    %8 = vector.broadcast %cst : f32 to vector<16x256xf32>
    %9 = arith.addf %7, %8 : vector<16x256xf32>
    %c0_5 = arith.constant 0 : index
    %c0_6 = arith.constant 0 : index
    %c0_7 = arith.constant 0 : index
    %10 = vector.load %arg5[%c0_5, %c0_6, %c0_7] : memref<1x16x256xf32, #tpu.memory_space<vmem>>, vector<1x16x256xf32>
    %11 = vector.shape_cast %10 : vector<1x16x256xf32> to vector<16x256xf32>
    %12 = arith.mulf %11, %9 : vector<16x256xf32>
    %c0_8 = arith.constant 0 : index
    %c0_9 = arith.constant 0 : index
    %c0_10 = arith.constant 0 : index
    %13 = vector.load %arg6[%c0_8, %c0_9, %c0_10] : memref<1x16x256xf32, #tpu.memory_space<vmem>>, vector<1x16x256xf32>
    %14 = vector.shape_cast %13 : vector<1x16x256xf32> to vector<16x256xf32>
    %15 = vector.shape_cast %12 : vector<16x256xf32> to vector<1x16x256xf32>
    tpu.vector_store %arg6[%c0_8, %c0_9, %c0_10], %15 {strides = array<i32>} : memref<1x16x256xf32, #tpu.memory_space<vmem>>, vector<1x16x256xf32>,
    return
  }
  func.func @transform_0(%arg0: i32, %arg1: i32, %arg2: i32) -> (i32, i32, i32) {
    %c0_i32 = arith.constant 0 : i32
    %c0_i32_0 = arith.constant 0 : i32
    %c0_i32_1 = arith.constant 0 : i32
    return %c0_i32, %arg1, %c0_i32_0 : i32, i32, i32
  }
  func.func @transform_1(%arg0: i32, %arg1: i32, %arg2: i32) -> (i32, i32, i32) {
    %c0_i32 = arith.constant 0 : i32
    %c0_i32_0 = arith.constant 0 : i32
    %c0_i32_1 = arith.constant 0 : i32
    return %c0_i32, %c0_i32_0, %arg2 : i32, i32, i32
  }
  func.func @transform_2(%arg0: i32, %arg1: i32, %arg2: i32) -> (i32, i32, i32) {
    %c0_i32 = arith.constant 0 : i32
    return %arg0, %arg1, %arg2 : i32, i32, i32
  }
  func.func @transform_3(%arg0: i32, %arg1: i32, %arg2: i32) -> (i32, i32, i32) {
    %c0_i32 = arith.constant 0 : i32
    return %arg0, %arg1, %arg2 : i32, i32, i32
  }
}

</mosaic_0001>

<bundles_post_ra>
// kernel: tpu_custom_call.1
= control target key start
LH: loop header
LB: loop body
LE: loop exit
PB: predicated region body
PF: predicated region fallthrough
CT: control target
= control target key end

     0   :  { %8 = vsyncpa [#allocation3], 0  ;;  %s829_s0 = inlined_call_operand.vmem [shape: f32[1,16,1], index: 0, kind: input, shape index: {}]   ;;  %s830_s1 = inlined_call_operand.vmem [shape: f32[1,1,256], index: 1, kind: input, shape index: {}]   ;;  %s831_s2 = inlined_call_operand.hbm [shape: f32[2,16,256], index: 2, kind: input, shape index: {}]   ;;  %s832_s3 = inlined_call_operand.hbm [shape: f32[2,16,256], index: 3, kind: output, shape index: {}]  }
   0x1   :  { %10 = vsyncpa [#allocation3 + $0x1], 0 }
   0x2   :  { %11 = vsyncpa [#allocation4], 0 }
   0x3   :  { %13 = vsyncpa [#allocation4 + $0x1], 0  ;;  %s690_s12 = smov 0   ;;  %s692_s13 = smov 0  }
   0x4   :  { %s694_s14 = smov 0   ;;  %s696_s15 = smov 0  }
   0x5   :  { %s698_s16 = smov 0   ;;  %s700_s17 = smov 0  }
   0x6 LB: > { %s456_s18 = sadd.s32 4294967295, %s663_s17   ;;  %s457_s19 = sadd.s32 4294967294, %s663_s17   ;;  %s663_s17 = sphi %s700_s17, %s19_s17   ;;  %s659_s16 = sphi %s698_s16, %s841_s16   ;;  %s655_s15 = sphi %s696_s15, %s840_s15   ;;  %s651_s14 = sphi %s694_s14, %s839_s14   ;;  %s647_s13 = sphi %s692_s13, %s838_s13   ;;  %s643_s12 = sphi %s690_s12, %s837_s12  }
   0x7   : > { %s38_s20 = sadd.s32 1, %s659_s16  ;;  %s101_s21 = sadd.s32 1, %s651_s14 }
   0x8   : > { %p40_p0 = scmp.ge.s32.totalorder %s38_s20, 2  ;;  %p108_p1 = scmp.ne.s32.totalorder %s651_s14, %s647_s13 }
   0x9   : > { %p109_p2 = scmp.eq.s32.totalorder %s663_s17, 0  ;;  %p114_p3 = scmp.ne.s32.totalorder %s647_s13, %s643_s12 }
   0xa   : > { %s843_s20 = smov (%p40_p0, %s38_s20), 0  ;;  %p115_p5 = scmp.eq.s32.totalorder %s456_s18, 0 }
   0xb   : > { %p731_p4 = por %p109_p2, %p108_p1  ;;  %s94_s23 = ssub.s32 %s659_s16, %s843_s20 }
   0xc   : > { %p142_p6 = scmp.eq.s32.totalorder %s456_s18, 1  ;;  %p99_p7 = scmp.eq.s32.totalorder %s94_s23, 0 }
   0xd   : > { %p737_p8 = por %p115_p5, %p114_p3  ;;  %p148_p10 = scmp.eq.s32.totalorder %s457_s19, 1 }
   0xe   : > { %p741_p9 = por %p142_p6, %p108_p1  ;;  %p461_p12 = scmp.ge.s32.totalorder %s663_s17, 2 }
   0xf   : > { %s746_s26 = scalar_select %p99_p7, %s651_s14, %s101_s21  }
  0x10   : > { %p748_p11 = por %p148_p10, %p114_p3  ;;  %p487_p13 = scmp.lt.s32.totalorder %s663_s17, 2 }
  0x11   : > { %s185_s28 = sand.u32 1, %s651_s14   ;;  %s473_s30 = sshll.u32 %s659_s16, 5 }
  0x12   : > { %s462_s29 = sshll.u32 %s185_s28, 5  ;;  %s199_s6 = scalar_lea.hbm %s831_s2, %s473_s30 }
  0x13   : > { %s189_s7 = scalar_lea.vmem [#allocation2], %s462_s29  ;;  %s200_s9 = sshll.u32 %s199_s6, 4  ;;  %s201_s9 = int_to_ptr.hbm [resolvable:$true] %s200_s9 }
  0x14   : > { %s202_s8 = sshll.u32 %s189_s7, 4  ;;  %p480_p0 = pnand %p487_p13, %p731_p4  ;;  %s203_s8 = int_to_ptr.vmem [resolvable:$true] %s202_s8 }
  0x15   : > { %p465_p1 = scmp.ge.s32.totalorder %s663_s17, 1  ;;  %s186_s10 = scalar_lea.sflag [#allocation3], %s185_s28 }
  0x16   : > { %s665_s11 = smov 256   ;;  %s666_s18 = smov 16  }
  0x17   : > { %482 = dma.hbm_to_vmem [thread:$0]  (!%p480_p0), %s201_s9, 512, %s203_s8, %s186_s10, %s665_s11, %s665_s11, %s666_s18  }
  0x18   : > { %p210_p2 = scmp.lt.s32.totalorder %s663_s17, 3 }
  0x1a   : > { %p211_p3 = pnand %p465_p1, %p210_p2 }
  0x1b   : > { %s764_s19 = sand.u32 (!%p211_p3), 1, %s647_s13  }
  0x1c   : > { %214 = sbr.rel (%p211_p3) target bundleno = 179 (0xb3), region = 32  ;;  %s466_s21 = sshll.u32 (!%p211_p3), %s764_s19, 5 }
  0x1d   : > { %s217_s23 = scalar_lea.sflag (!%p211_p3), [#allocation3], %s764_s19  ;;  %s770_s22 = scalar_lea.vmem (!%p211_p3), [#allocation2], %s466_s21 }
  0x21   : > { %634 = dma.done.wait (%p737_p8), %s217_s23, 512  }
  0x22   : > { %636 = vsyncadd (%p737_p8), %s217_s23, 4294966784  ;;  %v667_v0 = vmov 0   ;;  %v268_v1 = vld [vmem:[%s829_s0] sm:$0xff]  ;;  %v269_v2 = vld [vmem:[%s829_s0 + $0x8] sm:$0xff]  ;;  %s474_s24 = sshll.u32 %s655_s15, 5  ;;  %s252_s7 = scalar_lea.vmem [#allocation5], %s466_s21 }
  0x23   : > { %542 = vset.pattern.permute.xlu0 %v667_v0  ;;  %v270_v3 = vld [vmem:[%s830_s1] sm:$0x3]  ;;  %v303_v19 = vld [vmem:[%s770_s22 + $0x8] sm:$0xff]  ;;  %s331_s10 = scalar_lea.hbm %s832_s3, %s474_s24  ;;  %s332_s11 = sshll.u32 %s252_s7, 4  ;;  %v304_v25 = vld [vmem:[%s770_s22 + $0x10] sm:$0xff]  ;;  %s333_s11 = int_to_ptr.vmem [resolvable:$true] %s332_s11 }
  0x24   : > { %273 = vperm.xlu0 %542, %v268_v1   ;;  %v282_v4 = vperm.slane %v270_v3, 0  ;;  %v283_v5 = vperm.slane %v270_v3, 1  ;;  %v302_v15 = vld [vmem:[%s770_s22] sm:$0xff]  ;;  %s334_s18 = sshll.u32 %s331_s10, 4  ;;  %v305_v27 = vld [vmem:[%s770_s22 + $0x18] sm:$0xff]  ;;  %s315_s15 = scalar_lea.sflag [#allocation4], %s764_s19  ;;  %s335_s18 = int_to_ptr.hbm [resolvable:$true] %s334_s18 }
  0x25   : > { %s595_s21 = sshra.s32 %s335_s18, 4  ;;  %s601_s22 = scalar_lea.hbm %s832_s3, 64  ;;  %s596_s21 = int_to_ptr.hbm [resolvable:$true] %s595_s21 }
  0x26   : > { %s597_s23 = scalar_lea.hbm %s596_s21, 32  ;;  %p602_p7 = scmp.lt.s32.totalorder %s596_s21, %s832_s3 }
  0x27   : > { %p598_p4 = scmp.ne.s32.totalorder %s596_s21, %s597_s23  ;;  %p603_p8 = scmp.lt.s32.totalorder %s601_s22, %s597_s23 }
  0x29   : > { %p599_p5 = pnand %p598_p4, %p741_p9  ;;  %p604_p10 = por %p603_p8, %p602_p7 }
  0x2b   : > { %p600_p6 = pneg %p599_p5 }
  0x2c   : > { %278 = vperm.xlu0 %542, %v269_v2  }
  0x2d   : > { %p605_p13 = pnand %p604_p10, %p600_p6 }
  0x96   : > { %v274_v6 = vpop.permute.xlu0 %273 }
  0x97   : > { %v286_v7 = vmul.f32 %v282_v4, %v274_v6  ;;  %v287_v8 = vmul.f32 %v283_v5, %v274_v6 }
  0x99   : > { %v290_v9 = vmul.f32 1.442695, %v286_v7  ;;  %v292_v10 = vmul.f32 1.442695, %v287_v8 }
  0x9b   : > { %543 = vpow2.f32 %v290_v9 }
  0x9c   : > { %545 = vpow2.f32 %v292_v10 }
  0x9e   : > { %v279_v11 = vpop.permute.xlu0 %278 }
  0x9f   : > { %v288_v12 = vmul.f32 %v282_v4, %v279_v11  ;;  %v289_v13 = vmul.f32 %v283_v5, %v279_v11 }
  0xa1   : > { %v544_v14 = vpop.eup %543  ;;  %v294_v16 = vmul.f32 1.442695, %v288_v12  ;;  %v296_v17 = vmul.f32 1.442695, %v289_v13 }
  0xa2   : > { %v546_v18 = vpop.eup %545  ;;  %v298_v20 = vadd.f32 0.05, %v544_v14 }
  0xa3   : > { %v299_v21 = vadd.f32 0.05, %v546_v18  ;;  %547 = vpow2.f32 %v294_v16 }
  0xa4   : > { %v306_v22 = vmul.f32 %v302_v15, %v298_v20  ;;  %549 = vpow2.f32 %v296_v17 }
  0xa5   : > { %v307_v23 = vmul.f32 %v303_v19, %v299_v21 }
  0xa6   : > { %310 = vst [vmem:[%s252_s7] sm:$0xff] %v306_v22 }
  0xa7   : > { %311 = vst [vmem:[%s252_s7 + $0x8] sm:$0xff] %v307_v23 }
  0xa9   : > { %v548_v24 = vpop.eup %547 }
  0xaa   : > { %v550_v26 = vpop.eup %549  ;;  %v300_v28 = vadd.f32 0.05, %v548_v24 }
  0xab   : > { %v301_v29 = vadd.f32 0.05, %v550_v26 }
  0xac   : > { %v308_v30 = vmul.f32 %v304_v25, %v300_v28 }
  0xad   : > { %v309_v31 = vmul.f32 %v305_v27, %v301_v29 }
  0xae   : > { %312 = vst [vmem:[%s252_s7 + $0x10] sm:$0xff] %v308_v30 }
  0xaf   : > { %313 = vst [vmem:[%s252_s7 + $0x18] sm:$0xff] %v309_v31 }
  0xb0   : > { %608 = shalt.err (!%p605_p13)
}
  0xb1   : > { %s668_s19 = smov 256   ;;  %s669_s5 = smov 16  }
  0xb2   : > { %477 = dma.vmem_to_hbm [thread:$0]  (%p741_p9), %s333_s11, 512, %s335_s18, %s315_s15, %s668_s19, %s668_s19, %s669_s5  }
  0xb3 PF: > { %s349_s6 = sand.u32 1, %s643_s12   ;;  %p484_p0 = pnand %p461_p12, %p748_p11 }
  0xb4   : > { %s350_s24 = scalar_lea.sflag [#allocation4], %s349_s6 }
  0xb5   : > { %p485_p1 = pneg %p484_p0 }
  0xb7   : > { %638 = dma.done.wait (%p485_p1), %s350_s24, 512  }
  0xb8   : > { %640 = vsyncadd (%p485_p1), %s350_s24, 4294966784  ;;  %s19_s17 = sadd.s32 1, %s663_s17   ;;  %s837_s12 = smov %s647_s13 }
  0xb9   : > { %p16_p2 = scmp.ge.s32.totalorder %s19_s17, 4   ;;  %s838_s13 = smov %s651_s14 }
  0xba   : > { %s839_s14 = smov %s746_s26  ;;  %s840_s15 = smov %s659_s16 }
  0xbb   : > { %s841_s16 = smov %s843_s20  ;;  %18 = sbr.rel (!%p16_p2) target bundleno = 6 (0x6), region = 83 }
  0xc0   :  { %356 = vsyncpa [#allocation3], 1 }
  0xc1   :  { %358 = vsyncpa [#allocation3 + $0x1], 1 }
  0xc2   :  { %359 = vsyncpa [#allocation4], 1 }
  0xc3   :  { %361 = vsyncpa [#allocation4 + $0x1], 1 }

</bundles_post_ra>
